<compile_context>
chip_gen: v7x
topology: tpu7x:2x2x1
jax: 0.10.0
libtpu: 0.0.40
codegen_flags: <defaults>
</compile_context>

<pallas_src>
import jax
import jax.numpy as jnp
from jax.experimental import pallas as pl
from jax.experimental.pallas import tpu as pltpu


# -----------------------------------------------------------------------------
# Primary path: zero-copy aliased identity (empty kernel body).
# -----------------------------------------------------------------------------
def _identity_alias_kernel(x_ref, o_ref):
    # Output buffer IS the input buffer (input_output_aliases={0: 0}).
    # Nothing to compute, nothing to move: empty body is intentional.
    del x_ref, o_ref


def flash_genomics_model_forward(x: jax.Array) -> jax.Array:
    """Identity forward of FlashGenomicsModel.

    Zero-copy when the caller donates the input buffer
    (jax.jit(forward, donate_argnums=0)); otherwise XLA inserts a single
    defensive copy before the aliased call (still an exact identity).
    """
    return pl.pallas_call(
        _identity_alias_kernel,
        out_shape=jax.ShapeDtypeStruct(x.shape, x.dtype),
        in_specs=[pl.BlockSpec(memory_space=pl.ANY)],
        out_specs=pl.BlockSpec(memory_space=pl.ANY),
        input_output_aliases={0: 0},
    )(x)


# -----------------------------------------------------------------------------
# Materialized path: fresh output buffer via chunked HBM->HBM DMA.
# No VMEM staging, no core vld/vst traffic, no layout/alignment constraints.
# -----------------------------------------------------------------------------
def flash_genomics_model_forward_materialized(
    x: jax.Array, *, max_chunks: int = 4
) -> jax.Array:
    """Identity forward that writes a fresh buffer (DMA-engine HBM->HBM copy)."""
    if x.size == 0:
        return x  # nothing to copy

    orig_shape = x.shape
    xr = x.reshape((1,)) if x.ndim == 0 else x
    lead = xr.shape[0]

    # Split the leading axis into a few static chunks so the DMA engines can
    # overlap; 1 chunk is already near HBM roofline, 2-4 adds a little overlap.
    n_chunks = max(1, min(max_chunks, lead))
    base, rem = divmod(lead, n_chunks)
    bounds = []
    start = 0
    for c in range(n_chunks):
        size = base + (1 if c < rem else 0)
        bounds.append((start, start + size))
        start += size

    def _dma_copy_kernel(x_ref, o_ref, sem):
        # Issue every HBM->HBM DMA, then wait on all of them.  The bytes never
        # touch VMEM or the vector core — pure DMA-engine bandwidth.
        for c, (lo, hi) in enumerate(bounds):
            pltpu.make_async_copy(x_ref.at[lo:hi], o_ref.at[lo:hi], sem.at[c]).start()
        for c, (lo, hi) in enumerate(bounds):
            pltpu.make_async_copy(x_ref.at[lo:hi], o_ref.at[lo:hi], sem.at[c]).wait()

    y = pl.pallas_call(
        _dma_copy_kernel,
        out_shape=jax.ShapeDtypeStruct(xr.shape, xr.dtype),
        in_specs=[pl.BlockSpec(memory_space=pl.ANY)],
        out_specs=pl.BlockSpec(memory_space=pl.ANY),
        scratch_shapes=[pltpu.SemaphoreType.DMA((n_chunks,))],
    )(xr)
    return y.reshape(orig_shape)


if __name__ == "__main__":
    key = jax.random.PRNGKey(0)
    shape = (2, 4, 16, 16)  # (batch=2, channels=4, 16, 16), consistent with the module
    x = jax.random.normal(key, shape, dtype=jnp.float32)

    # 1) Aliased identity, non-donated call (XLA adds one defensive copy; exact).
    y = jax.block_until_ready(flash_genomics_model_forward(x))
    assert y.shape == x.shape and y.dtype == x.dtype
    assert bool(jnp.array_equal(y, x))

    # 2) Aliased identity with a donated buffer: the truly zero-copy path.
    #    (Same PRNG key -> bitwise-identical values; the donor is consumed.)
    x_donor = jax.random.normal(key, shape, dtype=jnp.float32)
    fwd_donating = jax.jit(flash_genomics_model_forward, donate_argnums=0)
    y_donated = jax.block_until_ready(fwd_donating(x_donor))
    assert y_donated.shape == x.shape and y_donated.dtype == x.dtype
    assert bool(jnp.array_equal(y_donated, x))

    # 3) Materialized copy via chunked HBM->HBM DMA.
    y_mat = jax.block_until_ready(flash_genomics_model_forward_materialized(x))
    assert y_mat.shape == x.shape and y_mat.dtype == x.dtype
    assert bool(jnp.array_equal(y_mat, x))

    print("KERNEL_OK")
</pallas_src>

<mosaic_0001>
module attributes {stable_mosaic.version = 11 : i64} {
  func.func @_identity_alias_kernel(%arg0: memref<2x4x16x16xf32, #tpu.memory_space<any>>, %arg1: memref<2x4x16x16xf32, #tpu.memory_space<any>>) attributes {dimension_semantics = [], scalar_prefetch = 0 : i64, scratch_operands = 0 : i64, tpu.core_type = #tpu.core_type<tc>} {
    return
  }
}

</mosaic_0001>

<bundles_post_ra>
// kernel: tpu_custom_call.1
= control target key start
LH: loop header
LB: loop body
LE: loop exit
PB: predicated region body
PF: predicated region fallthrough
CT: control target
= control target key end

     0   :  { %s16_s0 = inlined_call_operand.hbm [shape: f32[2,4,16,16], index: 0, kind: input, shape index: {}, may-alias: {0,1}]   ;;  %s17_s1 = inlined_call_operand.hbm [shape: f32[2,4,16,16], index: 1, kind: output, shape index: {}, may-alias: {0,1}]  }

</bundles_post_ra>
